<compile_context>
chip_gen: v7x
topology: tpu7x:2x2x1
jax: 0.10.0
libtpu: 0.0.40
codegen_flags: <defaults>
</compile_context>

<pallas_src>
import jax
import jax.numpy as jnp
from jax.experimental import pallas as pl
from jax.experimental.pallas import tpu as pltpu


def conv1x1_relu_kernel(x_ref, w_ref, b_ref, o_ref):
    # x_ref: (1, Cin, TS)   one image's channels for one spatial tile
    # w_ref: (Cout, Cin)    whole weight (tiny, resident across the grid)
    # b_ref: (Cout, 1)      whole bias   (tiny, resident across the grid)
    # o_ref: (1, Cout, TS)  lane-dense output tile
    x = x_ref[0].astype(jnp.float32)        # (Cin, TS)
    w = w_ref[...].astype(jnp.float32)      # (Cout, Cin)
    cout, cin = w.shape
    ts = x.shape[1]

    # Bias folded into the f32 accumulator init (once per output tile).
    acc = jnp.broadcast_to(b_ref[...].astype(jnp.float32), (cout, ts))

    # K = Cin = 3: not worth the MXU -- three VPU broadcast multiply-adds.
    for c in range(cin):  # static unroll
        acc = acc + w[:, c:c + 1] * x[c:c + 1, :]

    o_ref[0] = jnp.maximum(acc, 0.0).astype(o_ref.dtype)


def _pick_spatial_tile(hw, max_tile=2048):
    """Largest lane tile <= max_tile that is a multiple of 128 and divides hw."""
    if hw % 128 != 0 or hw <= 128:
        return hw  # full-extent block (allowed when equal to the array dim)
    ts = min(hw, max_tile)
    ts -= ts % 128
    while hw % ts != 0:
        ts -= 128
    return ts


def model_forward(x_nchw, weight_oc, bias, *, max_tile=2048):
    """x_nchw: (N, Cin, H, W); weight_oc: (Cout, Cin); bias: (Cout,)."""
    n, cin, h, w = x_nchw.shape
    cout = weight_oc.shape[0]
    hw = h * w

    # Pure reshapes: NCHW memory layout is already (N, Cin, H*W).
    x3 = x_nchw.reshape(n, cin, hw)
    b2 = bias.reshape(cout, 1)

    ts = _pick_spatial_tile(hw, max_tile)
    grid = (n, hw // ts)

    itemsize = jnp.dtype(x_nchw.dtype).itemsize
    cost = pl.CostEstimate(
        flops=2 * n * hw * cin * cout,
        transcendentals=0,
        bytes_accessed=(x3.size + weight_oc.size + bias.size + n * cout * hw)
        * itemsize,
    )

    out3 = pl.pallas_call(
        conv1x1_relu_kernel,
        out_shape=jax.ShapeDtypeStruct((n, cout, hw), x_nchw.dtype),
        grid_spec=pltpu.PrefetchScalarGridSpec(
            num_scalar_prefetch=0,
            grid=grid,
            in_specs=[
                pl.BlockSpec((1, cin, ts), lambda ni, si: (ni, 0, si)),
                pl.BlockSpec((cout, cin), lambda ni, si: (0, 0)),
                pl.BlockSpec((cout, 1), lambda ni, si: (0, 0)),
            ],
            out_specs=pl.BlockSpec((1, cout, ts), lambda ni, si: (ni, 0, si)),
        ),
        compiler_params=pltpu.CompilerParams(
            # Both grid axes independent -> megacore sharding on v7x;
            # harmless on single-TC v5e/v6e.
            dimension_semantics=("parallel", "parallel"),
        ),
        cost_estimate=cost,
    )(x3, weight_oc, b2)

    return out3.reshape(n, cout, h, w)


if __name__ == "__main__":
    key = jax.random.PRNGKey(0)
    k_x, k_w, k_b = jax.random.split(key, 3)

    # Small shapes consistent with the module's example tensor (NCHW, Cin=3).
    N, CIN, H, W = 2, 3, 32, 32
    COUT = 8

    x = jax.random.normal(k_x, (N, CIN, H, W), dtype=jnp.float32)
    weight = jax.random.normal(k_w, (COUT, CIN), dtype=jnp.float32) * 0.1
    bias = jax.random.normal(k_b, (COUT,), dtype=jnp.float32) * 0.1

    # max_tile=512 -> two spatial tiles per image (exercises the grid).
    out = model_forward(x, weight, bias, max_tile=512)
    jax.block_until_ready(out)

    # Reference: 1x1 conv (channel matmul) + bias + relu, in plain JAX.
    ref = jnp.maximum(
        jnp.einsum("nchw,oc->nohw", x, weight) + bias[None, :, None, None], 0.0
    )
    assert out.shape == (N, COUT, H, W)
    assert jnp.allclose(out, ref, atol=1e-5, rtol=1e-5)

    print("KERNEL_OK")
</pallas_src>

<mosaic_0001>
module attributes {stable_mosaic.version = 11 : i64} {
  func.func @conv1x1_relu_kernel(%arg0: i32, %arg1: i32, %arg2: memref<1x3x512xf32, #tpu.memory_space<vmem>>, %arg3: memref<8x3xf32, #tpu.memory_space<vmem>>, %arg4: memref<8x1xf32, #tpu.memory_space<vmem>>, %arg5: memref<1x8x512xf32, #tpu.memory_space<vmem>>) attributes {dimension_semantics = [#tpu.dimension_semantics<parallel>, #tpu.dimension_semantics<parallel>], iteration_bounds = array<i64: 2, 2>, scalar_prefetch = 0 : i64, scratch_operands = 0 : i64, tpu.core_type = #tpu.core_type<tc>, window_params = [{transform_indices = @transform_0, window_bounds = array<i64: 1, 3, 512>}, {pipeline_mode = #tpu.pipeline_mode<synchronous>, transform_indices = @transform_1, window_bounds = array<i64: 8, 3>}, {pipeline_mode = #tpu.pipeline_mode<synchronous>, transform_indices = @transform_2, window_bounds = array<i64: 8, 1>}, {transform_indices = @transform_3, window_bounds = array<i64: 1, 8, 512>}]} {
    %c0 = arith.constant 0 : index
    %c0_0 = arith.constant 0 : index
    %c0_1 = arith.constant 0 : index
    %0 = vector.load %arg2[%c0, %c0_0, %c0_1] : memref<1x3x512xf32, #tpu.memory_space<vmem>>, vector<1x3x512xf32>
    %1 = vector.shape_cast %0 : vector<1x3x512xf32> to vector<3x512xf32>
    %c0_2 = arith.constant 0 : index
    %c0_3 = arith.constant 0 : index
    %2 = vector.load %arg3[%c0_2, %c0_3] : memref<8x3xf32, #tpu.memory_space<vmem>>, vector<8x3xf32>
    %c0_4 = arith.constant 0 : index
    %c0_5 = arith.constant 0 : index
    %3 = vector.load %arg4[%c0_4, %c0_5] : memref<8x1xf32, #tpu.memory_space<vmem>>, vector<8x1xf32>
    %4 = vector.shape_cast %3 : vector<8x1xf32> to vector<8x1xf32>
    %5 = vector.broadcast %4 : vector<8x1xf32> to vector<8x512xf32>
    %6 = vector.extract_strided_slice %2 {offsets = [0, 0], sizes = [8, 1], strides = [1, 1]} : vector<8x3xf32> to vector<8x1xf32>
    %7 = vector.extract_strided_slice %1 {offsets = [0, 0], sizes = [1, 512], strides = [1, 1]} : vector<3x512xf32> to vector<1x512xf32>
    %8 = vector.broadcast %6 : vector<8x1xf32> to vector<8x512xf32>
    %9 = vector.broadcast %7 : vector<1x512xf32> to vector<8x512xf32>
    %10 = arith.mulf %8, %9 : vector<8x512xf32>
    %11 = arith.addf %5, %10 : vector<8x512xf32>
    %12 = vector.extract_strided_slice %2 {offsets = [0, 1], sizes = [8, 1], strides = [1, 1]} : vector<8x3xf32> to vector<8x1xf32>
    %13 = vector.extract_strided_slice %1 {offsets = [1, 0], sizes = [1, 512], strides = [1, 1]} : vector<3x512xf32> to vector<1x512xf32>
    %14 = vector.broadcast %12 : vector<8x1xf32> to vector<8x512xf32>
    %15 = vector.broadcast %13 : vector<1x512xf32> to vector<8x512xf32>
    %16 = arith.mulf %14, %15 : vector<8x512xf32>
    %17 = arith.addf %11, %16 : vector<8x512xf32>
    %18 = vector.extract_strided_slice %2 {offsets = [0, 2], sizes = [8, 1], strides = [1, 1]} : vector<8x3xf32> to vector<8x1xf32>
    %19 = vector.extract_strided_slice %1 {offsets = [2, 0], sizes = [1, 512], strides = [1, 1]} : vector<3x512xf32> to vector<1x512xf32>
    %20 = vector.broadcast %18 : vector<8x1xf32> to vector<8x512xf32>
    %21 = vector.broadcast %19 : vector<1x512xf32> to vector<8x512xf32>
    %22 = arith.mulf %20, %21 : vector<8x512xf32>
    %23 = arith.addf %17, %22 : vector<8x512xf32>
    %cst = arith.constant 0.000000e+00 : f32
    %24 = vector.broadcast %cst : f32 to vector<8x512xf32>
    %25 = arith.maximumf %23, %24 : vector<8x512xf32>
    %c0_6 = arith.constant 0 : index
    %c0_7 = arith.constant 0 : index
    %c0_8 = arith.constant 0 : index
    %26 = vector.load %arg5[%c0_6, %c0_7, %c0_8] : memref<1x8x512xf32, #tpu.memory_space<vmem>>, vector<1x8x512xf32>
    %27 = vector.shape_cast %26 : vector<1x8x512xf32> to vector<8x512xf32>
    %28 = vector.shape_cast %25 : vector<8x512xf32> to vector<1x8x512xf32>
    tpu.vector_store %arg5[%c0_6, %c0_7, %c0_8], %28 {strides = array<i32>} : memref<1x8x512xf32, #tpu.memory_space<vmem>>, vector<1x8x512xf32>,
    return
  }
  func.func @transform_0(%arg0: i32, %arg1: i32) -> (i32, i32, i32) {
    %c0_i32 = arith.constant 0 : i32
    %c0_i32_0 = arith.constant 0 : i32
    return %arg0, %c0_i32, %arg1 : i32, i32, i32
  }
  func.func @transform_1(%arg0: i32, %arg1: i32) -> (i32, i32) {
    %c0_i32 = arith.constant 0 : i32
    %c0_i32_0 = arith.constant 0 : i32
    %c0_i32_1 = arith.constant 0 : i32
    return %c0_i32, %c0_i32_0 : i32, i32
  }
  func.func @transform_2(%arg0: i32, %arg1: i32) -> (i32, i32) {
    %c0_i32 = arith.constant 0 : i32
    %c0_i32_0 = arith.constant 0 : i32
    %c0_i32_1 = arith.constant 0 : i32
    return %c0_i32, %c0_i32_0 : i32, i32
  }
  func.func @transform_3(%arg0: i32, %arg1: i32) -> (i32, i32, i32) {
    %c0_i32 = arith.constant 0 : i32
    %c0_i32_0 = arith.constant 0 : i32
    return %arg0, %c0_i32, %arg1 : i32, i32, i32
  }
}

</mosaic_0001>

<bundles_post_ra>
// kernel: tpu_custom_call.1
= control target key start
LH: loop header
LB: loop body
LE: loop exit
PB: predicated region body
PF: predicated region fallthrough
CT: control target
= control target key end

     0   :  { %8 = vsyncpa [#allocation3], 0  ;;  %s826_s0 = inlined_call_operand.vmem [shape: f32[2,3,1024], index: 0, kind: input, shape index: {}]   ;;  %s827_s1 = inlined_call_operand.vmem [shape: f32[8,3], index: 1, kind: input, shape index: {}]   ;;  %s828_s2 = inlined_call_operand.vmem [shape: f32[8,1], index: 2, kind: input, shape index: {}]   ;;  %s829_s3 = inlined_call_operand.hbm [shape: f32[2,8,1024], index: 3, kind: output, shape index: {}]  }
   0x1   :  { %10 = vsyncpa [#allocation3 + $0x1], 0  ;;  %s673_s12 = smov 0   ;;  %s675_s13 = smov 0  }
   0x2   :  { %s677_s14 = smov 0   ;;  %s679_s15 = smov 0  }
   0x3   :  { %s681_s16 = smov 0   ;;  %s683_s17 = smov 0  }
   0x4   :  { %s685_s18 = smov 0   ;;  %s687_s19 = smov 0  }
   0x5 LB: > { %s460_s20 = sadd.s32 4294967295, %s647_s19   ;;  %s461_s21 = sadd.s32 4294967294, %s647_s19   ;;  %s647_s19 = sphi %s687_s19, %s16_s19   ;;  %s643_s18 = sphi %s685_s18, %s838_s18   ;;  %s639_s17 = sphi %s683_s17, %s837_s17   ;;  %s635_s16 = sphi %s681_s16, %s836_s16   ;;  %s631_s15 = sphi %s679_s15, %s835_s15   ;;  %s627_s14 = sphi %s677_s14, %s834_s14   ;;  %s623_s13 = sphi %s675_s13, %s833_s13   ;;  %s619_s12 = sphi %s673_s12, %s832_s12  }
   0x6   : > { %s25_s22 = sadd.s32 1, %s639_s17  ;;  %s28_s23 = sadd.s32 1, %s643_s18 }
   0x7   : > { %p26_p0 = scmp.ge.s32.totalorder %s25_s22, 2  ;;  %p117_p1 = scmp.ne.s32.totalorder %s627_s14, %s623_s13 }
   0x8   : > { %p118_p2 = scmp.eq.s32.totalorder %s460_s20, 3  ;;  %p123_p5 = scmp.ne.s32.totalorder %s623_s13, %s619_s12 }
   0x9   : > { %s840_s22 = smov (%p26_p0, %s25_s22), 0  ;;  %s842_s23 = smov (!%p26_p0, %s28_s23), %s643_s18 }
   0xa   : > { %s103_s24 = ssub.s32 %s639_s17, %s840_s22  ;;  %p724_p3 = por %p118_p2, %p117_p1 }
   0xb   : > { %p30_p4 = scmp.ge.s32.totalorder %s842_s23, 2  ;;  %p124_p6 = scmp.eq.s32.totalorder %s461_s21, 3 }
   0xc   : > { %p464_p7 = scmp.ge.s32.totalorder %s647_s19, 1  ;;  %p161_p9 = scmp.lt.s32.totalorder %s647_s19, 5 }
   0xd   : > { %s844_s23 = smov (%p30_p4, %s842_s23), 0  ;;  %p733_p8 = por %p124_p6, %p123_p5 }
   0xe   : > { %s102_s27 = ssub.s32 %s643_s18, %s844_s23  ;;  %s107_s28 = sadd.s32 1, %s627_s14 }
   0xf   : > { %s104_s29 = sor.u32 %s103_s24, %s102_s27  ;;  %p162_p10 = pnand %p464_p7, %p161_p9 }
  0x10   : > { %p105_p11 = scmp.eq.s32.totalorder %s104_s29, 0  ;;  %v202_v0 = vld [vmem:[%s827_s1] sm:$0xff] (!%p162_p10)  ;;  %v649_v1 = vmov (!%p162_p10), 0   ;;  %v650_v2 = vmov (!%p162_p10), 1   ;;  %v651_v4 = vmov (!%p162_p10), 2   ;;  %s751_s8 = sshll.u32 (!%p162_p10), %s631_s15, 2  ;;  %v216_v5 = vlaneseq (!%p162_p10) }
  0x11   : > { %165 = sbr.rel (%p162_p10) target bundleno = 174 (0xae), region = 32  ;;  %549 = vset.pattern.permute.xlu0 (!%p162_p10), %v649_v1  ;;  %550 = vset.pattern.permute.xlu1 (!%p162_p10), %v650_v2  ;;  %v203_v3 = vld [vmem:[%s828_s2] sm:$0xff] (!%p162_p10)  ;;  %p190_p12 = scmp.lt.s32.totalorder (!%p162_p10), %s635_s16, 1 }
  0x12   : > { %s742_s30 = scalar_select %p105_p11, %s627_s14, %s107_s28  }
  0x13   : > { %211 = vperm.xlu0 (!%p162_p10), %549, %v202_v0   ;;  %261 = vperm.xlu1 (!%p162_p10), %550, %v202_v0   ;;  %p192_p13 = scmp.lt.s32.totalorder (!%p162_p10), %s751_s8, 7  ;;  %v217_v6 = vshrl.u32 (!%p162_p10), %v216_v5, 7  ;;  %s186_s15 = sand.u32 (!%p162_p10), 1, %s623_s13  }
  0x14   : > { %s763_s29 = sshll.u32 (!%p162_p10), %s186_s15, 5  ;;  %s471_s4 = sshll.u32 (!%p162_p10), %s635_s16, 3 }
  0x15   : > { %v218_v7 = vsub.s32 (!%p162_p10), 0, %v217_v6  ;;  %v222_v8 = vsub.s32 (!%p162_p10), 4, %v217_v6  ;;  %v266_v9 = vsub.s32 (!%p162_p10), 1, %v217_v6  ;;  %v270_v10 = vsub.s32 (!%p162_p10), 5, %v217_v6  ;;  %s377_s5 = sadd.s32 (!%p162_p10), %s471_s4, %s751_s8  ;;  %s188_s6 = scalar_lea.vmem (!%p162_p10), [#allocation2], %s763_s29 }
  0x16   : > { %v314_v13 = vsub.s32 (!%p162_p10), 2, %v217_v6  ;;  %v318_v14 = vsub.s32 (!%p162_p10), 6, %v217_v6  ;;  %s381_s7 = sshll.u32 (!%p162_p10), %s188_s6, 4  ;;  %s773_s7 = int_to_ptr.vmem [resolvable:$true] %s381_s7 }
  0x17   : > { %206 = vperm.xlu0 (!%p162_p10), %549, %v203_v3   ;;  %551 = vset.pattern.permute.xlu1 (!%p162_p10), %v651_v4 }
  0x18   : > { %309 = vperm.xlu1 %551, %v202_v0   ;;  %s191_s9 = scalar_select %p190_p12, %s635_s16, 1 }
  0x19   : > { %s193_s10 = scalar_select %p192_p13, %s751_s8, 7 }
  0x1a   : > { %s467_s11 = sshll.u32 %s191_s9, 3  ;;  %s472_s16 = sshll.u32 %s377_s5, 7 }
  0x1b   : > { %552 = vset.pattern.permute.xlu0 %v651_v4  ;;  %s195_s20 = sadd.s32 %s467_s11, %s193_s10  ;;  %s771_s10 = scalar_lea.hbm %s829_s3, %s472_s16 }
  0x1c   : > { %s468_s21 = sshll.u32 %s195_s20, 2  ;;  %s365_s11 = scalar_lea.sflag [#allocation3], %s186_s15 }
  0x1d   : > { %s197_s28 = scalar_lea.vmem %s826_s0, %s468_s21  ;;  %s553_s20 = scalar_lea.vmem %s773_s7, 512 }
  0x1e   : > { %v200_v11 = vld [vmem:[%s197_s28] sm:$0x77]  ;;  %v201_v12 = vld [vmem:[%s197_s28 + $0x8] sm:$0x77]  ;;  %p554_p0 = scmp.ne.s32.totalorder %s773_s7, %s553_s20  ;;  %s652_s21 = smov [#allocation2]  }
  0x1f   : > { %v219_v15 = vrot.slane %v200_v11, %v218_v7  ;;  %v223_v16 = vrot.slane %v200_v11, %v222_v8  ;;  %v227_v17 = vrot.slane %v201_v12, %v218_v7  ;;  %v231_v18 = vrot.slane %v201_v12, %v222_v8  ;;  %s557_s24 = sshll.u32 %s652_s21, 4  ;;  %s558_s24 = int_to_ptr.vmem [resolvable:$false] %s557_s24 }
  0x20   : > { %v267_v19 = vrot.slane %v200_v11, %v266_v9  ;;  %v271_v20 = vrot.slane %v200_v11, %v270_v10  ;;  %v275_v21 = vrot.slane %v201_v12, %v266_v9  ;;  %v279_v22 = vrot.slane %v201_v12, %v270_v10  ;;  %p555_p1 = pnand %p554_p0, %p724_p3  ;;  %s559_s27 = scalar_lea.vmem %s558_s24, 1024 }
  0x21   : > { %v315_v23 = vrot.slane %v200_v11, %v314_v13  ;;  %v319_v24 = vrot.slane %v200_v11, %v318_v14  ;;  %v323_v25 = vrot.slane %v201_v12, %v314_v13  ;;  %v327_v26 = vrot.slane %v201_v12, %v318_v14  ;;  %p560_p4 = scmp.lt.s32.totalorder %s773_s7, %s558_s24  ;;  %p561_p5 = scmp.lt.s32.totalorder %s559_s27, %s553_s20 }
  0x22   : > { %v239_v27 = vrot.slane %v219_v15, %v218_v7  ;;  %v243_v28 = vrot.slane %v223_v16, %v218_v7  ;;  %v247_v29 = vrot.slane %v227_v17, %v218_v7  ;;  %v251_v30 = vrot.slane %v231_v18, %v218_v7  ;;  %p556_p2 = pneg %p555_p1 }
  0x23   : > { %v287_v33 = vrot.slane %v267_v19, %v266_v9  ;;  %v291_v34 = vrot.slane %v271_v20, %v266_v9  ;;  %v295_v35 = vrot.slane %v275_v21, %v266_v9  ;;  %v299_v36 = vrot.slane %v279_v22, %v266_v9  ;;  %p562_p6 = por %p561_p5, %p560_p4 }
  0x24   : > { %v335_v37 = vrot.slane %v315_v23, %v314_v13  ;;  %v339_v38 = vrot.slane %v319_v24, %v314_v13  ;;  %v343_v39 = vrot.slane %v323_v25, %v314_v13  ;;  %v347_v40 = vrot.slane %v327_v26, %v314_v13 }
  0x25   : > { %p563_p7 = pnand %p562_p6, %p556_p2 }
  0x92   : > { %v212_v31 = vpop.permute.xlu0 %211  ;;  %v262_v32 = vpop.permute.xlu1 %261 }
  0x93   : > { %v252_v41 = vmul.f32 %v239_v27, %v212_v31  ;;  %v253_v42 = vmul.f32 %v243_v28, %v212_v31  ;;  %v254_v43 = vmul.f32 %v247_v29, %v212_v31  ;;  %v255_v44 = vmul.f32 %v251_v30, %v212_v31 }
  0x94   : > { %v300_v45 = vmul.f32 %v287_v33, %v262_v32  ;;  %v301_v46 = vmul.f32 %v291_v34, %v262_v32  ;;  %v302_v47 = vmul.f32 %v295_v35, %v262_v32  ;;  %v303_v48 = vmul.f32 %v299_v36, %v262_v32 }
  0x96   : > { %v207_v49 = vpop.permute.xlu0 %206 }
  0x97   : > { %v256_v50 = vadd.f32 %v252_v41, %v207_v49  ;;  %v257_v51 = vadd.f32 %v253_v42, %v207_v49  ;;  %v258_v52 = vadd.f32 %v254_v43, %v207_v49  ;;  %v259_v53 = vadd.f32 %v255_v44, %v207_v49  ;;  %v310_v54 = vpop.permute.xlu1 %309 }
  0x98   : > { %v348_v55 = vmul.f32 %v335_v37, %v310_v54  ;;  %v349_v56 = vmul.f32 %v339_v38, %v310_v54  ;;  %v350_v57 = vmul.f32 %v343_v39, %v310_v54  ;;  %v351_v58 = vmul.f32 %v347_v40, %v310_v54 }
  0x99   : > { %v304_v59 = vadd.f32 %v300_v45, %v256_v50  ;;  %v305_v60 = vadd.f32 %v301_v46, %v257_v51  ;;  %v306_v61 = vadd.f32 %v302_v47, %v258_v52  ;;  %v307_v62 = vadd.f32 %v303_v48, %v259_v53 }
  0x9b   : > { %v352_v63 = vadd.f32 %v348_v55, %v304_v59  ;;  %v353_v0 = vadd.f32 %v349_v56, %v305_v60  ;;  %v354_v1 = vadd.f32 %v350_v57, %v306_v61  ;;  %v355_v2 = vadd.f32 %v351_v58, %v307_v62 }
  0x9d   : > { %v356_v3 = vmax.f32 %v352_v63, 0.0  ;;  %v357_v4 = vmax.f32 %v353_v0, 0.0  ;;  %v358_v5 = vmax.f32 %v354_v1, 0.0  ;;  %v359_v6 = vmax.f32 %v355_v2, 0.0 }
  0x9f   : > { %360 = vst [vmem:[%s188_s6] sm:$0xff] %v356_v3  ;;  %361 = vst [vmem:[%s188_s6 + $0x8] sm:$0xff] %v357_v4 }
  0xa0   : > { %362 = vst [vmem:[%s188_s6 + $0x10] sm:$0xff] %v358_v5  ;;  %363 = vst [vmem:[%s188_s6 + $0x18] sm:$0xff] %v359_v6 }
  0xa1   : > { %566 = shalt.err (!%p563_p7)
}
  0xa2   : > { %s567_s28 = scalar_lea.hbm %s771_s10, 512  ;;  %s571_s4 = scalar_lea.hbm %s829_s3, 2048 }
  0xa3   : > { %p568_p9 = scmp.ne.s32.totalorder %s771_s10, %s567_s28  ;;  %p572_p12 = scmp.lt.u32.totalorder %s771_s10, %s829_s3 }
  0xa4   : > { %p573_p13 = scmp.lt.u32.totalorder %s571_s4, %s567_s28  ;;  %p575_p1 = scmp.lt.u32.totalorder %s567_s28, %s771_s10 }
  0xa5   : > { %p569_p10 = pnand %p568_p9, %p724_p3 }
  0xa6   : > { %p574_p0 = por %p573_p13, %p572_p12 }
  0xa7   : > { %p570_p11 = pneg %p569_p10 }
  0xa8   : > { %p576_p2 = por %p575_p1, %p574_p0 }
  0xaa   : > { %p577_p4 = pnand %p576_p2, %p570_p11 }
  0xac   : > { %580 = shalt.err (!%p577_p4)
}
  0xad   : > { %475 = dma.vmem_to_hbm [thread:$0]  (%p724_p3), %s773_s7, 512, %s771_s10, %s365_s11  }
  0xae PF: > { %p481_p5 = scmp.ge.s32.totalorder %s647_s19, 2  ;;  %s393_s6 = sand.u32 1, %s619_s12  }
  0xaf   : > { %s394_s8 = scalar_lea.sflag [#allocation3], %s393_s6 }
  0xb0   : > { %p478_p6 = pnand %p481_p5, %p733_p8 }
  0xb2   : > { %614 = dma.done.wait (!%p478_p6), %s394_s8, 512  }
  0xb3   : > { %616 = vsyncadd (!%p478_p6), %s394_s8, 4294966784  ;;  %s16_s19 = sadd.s32 1, %s647_s19   ;;  %s832_s12 = smov %s623_s13 }
  0xb4   : > { %p13_p7 = scmp.ge.s32.totalorder %s16_s19, 6   ;;  %s833_s13 = smov %s627_s14 }
  0xb5   : > { %s834_s14 = smov %s742_s30  ;;  %s835_s15 = smov %s639_s17 }
  0xb6   : > { %s836_s16 = smov %s643_s18  ;;  %s837_s17 = smov %s840_s22 }
  0xb7   : > { %s838_s18 = smov %s844_s23  ;;  %15 = sbr.rel (!%p13_p7) target bundleno = 5 (0x5), region = 67 }
  0xbe   :  { %399 = vsyncpa [#allocation3], 1 }
  0xbf   :  { %401 = vsyncpa [#allocation3 + $0x1], 1 }

</bundles_post_ra>
